<compile_context>
chip_gen: v7x
topology: tpu7x:2x2x1
jax: 0.10.0
libtpu: 0.0.40
codegen_flags: <defaults>
</compile_context>

<pallas_src>
import functools

import numpy as np
import jax
import jax.numpy as jnp
from jax.experimental import pallas as pl
from jax.experimental.pallas import tpu as pltpu


def _round_up(x, m):
    return ((x + m - 1) // m) * m


def xy_model_kernel(x_ref, w1_ref, w2_ref, b2_ref, sel_ref, out_ref,
                    *, K, H2, matmul_dtype):
    # x_ref: (K + S, tb) slab, rows = [state; action; ones; target], f32.
    x = x_ref[...]
    xu = x[:K, :].astype(matmul_dtype)          # (K, tb) = [state; action; ones]
    target = x[K:, :]                           # (S, tb) f32

    # Fused layer 1 + bias + expansion: (2H+F, K) @ (K, tb) -> (2H+F, tb).
    he = jnp.dot(w1_ref[...], xu, preferred_element_type=jnp.float32)
    h = jnp.maximum(he[:H2, :], 0.0)            # (2H, tb) relu'd pre-activation
    tiled = he[H2:, :]                          # (F, tb) lane-tiled [state|action]

    # Fused layer 2, block-diagonal: (F, 2H) @ (2H, tb) + b2 -> (F, tb).
    ab = (jnp.dot(w2_ref[...], h.astype(matmul_dtype),
                  preferred_element_type=jnp.float32)
          + b2_ref[...])

    # dx*dt via one elementwise multiply and one dt-scaled group-sum selector
    # matmul: (S, F) @ (F, tb) -> (S, tb).  No XLU reductions.
    dx_dt = jnp.dot(sel_ref[...], (ab * tiled).astype(matmul_dtype),
                    preferred_element_type=jnp.float32)

    out_ref[...] = (target + dx_dt).astype(out_ref.dtype)


def _build_fused_params(params, state_size, action_size, dt, matmul_dtype):
    """Build feature-major fused weights:
       w1_ext (2H+F, S+A+1): [[W1^T | b1]; expansion 0/1 block]
       w2     (F, 2H)      : block-diagonal [wa2^T 0; 0 wb2^T]
       b2     (F, 1)
       sel_dt (S, F)       : dt-scaled 0/1 group-sum selector
    """
    wa1, ba1, wa2, ba2, wb1, bb1, wb2, bb2 = params
    S, A = state_size, action_size
    H = wa1.shape[1]
    H2 = 2 * H
    F = S * S + S * A
    K = S + A + 1   # [state; action; ones]

    # Layer 1 transposed, A-branch rows then B-branch rows; bias folded into
    # the trailing "ones" column.
    w1t = jnp.concatenate([wa1, wb1], axis=1).T          # (2H, S+A)
    b1c = jnp.concatenate([ba1, bb1], axis=1).T          # (2H, 1)
    w1_block = jnp.concatenate([w1t, b1c], axis=1)        # (2H, K)

    # Expansion block (exact 0/1) and dt-scaled selector.
    e = np.zeros((F, K), np.float32)
    sel = np.zeros((S, F), np.float32)
    for i in range(S):
        for j in range(S):
            e[i * S + j, j] = 1.0
            sel[i, i * S + j] = dt
        for j in range(A):
            e[S * S + i * A + j, S + j] = 1.0
            sel[i, S * S + i * A + j] = dt

    w1_ext = jnp.concatenate([w1_block, jnp.asarray(e)],
                             axis=0).astype(matmul_dtype)   # (2H+F, K)

    # Layer 2 transposed, block-diagonal: A-branch sees h[:H], B-branch h[H:].
    w2 = jnp.zeros((F, H2), jnp.float32)
    w2 = w2.at[:S * S, :H].set(wa2.T).at[S * S:, H:].set(wb2.T)
    w2 = w2.astype(matmul_dtype)                             # (F, 2H)
    b2 = jnp.concatenate([ba2, bb2], axis=1).T               # (F, 1) f32

    sel_dt = jnp.asarray(sel).astype(matmul_dtype)            # (S, F)
    return w1_ext, w2, b2, sel_dt


def xy_model_forward(target, state, action, params, *, dt,
                     block_batch=2048, use_bf16=True):
    batch, S = state.shape
    A = action.shape[-1]
    mm_dtype = jnp.bfloat16 if use_bf16 else jnp.float32

    w1_ext, w2, b2, sel_dt = _build_fused_params(params, S, A, dt, mm_dtype)
    H2F, K = w1_ext.shape     # (2H + F, S+A+1)
    F = w2.shape[0]
    H2 = H2F - F
    R = K + S                 # slab rows: [state; action; ones; target]

    # Feature-major packed input slab (R, batch): one contiguous DMA stream.
    ones = jnp.ones((1, batch), jnp.float32)
    slab = jnp.concatenate([state.T, action.T, ones, target.T], axis=0)

    # Batch (lane) tiling: multiples of 128; cap at ~half the batch so the grid
    # has >=2 parallel steps when batch is large enough (v7x megacore).
    tb = max(128, min(_round_up(block_batch, 128),
                      _round_up(pl.cdiv(batch, 2), 128)))
    padded = _round_up(batch, tb)
    if padded != batch:
        slab = jnp.pad(slab, ((0, 0), (0, padded - batch)))
    grid = (padded // tb,)

    kernel = functools.partial(xy_model_kernel, K=K, H2=H2,
                               matmul_dtype=mm_dtype)

    flops = int(2 * padded * (K * H2F + H2 * F + F * S) + padded * F)
    bytes_accessed = int(
        4 * padded * (R + S)
        + sum(int(x.size) * x.dtype.itemsize for x in (w1_ext, w2, b2, sel_dt)))

    def resident(arr):
        # Full-array block, same block every grid step -> stays VMEM-resident.
        return pl.BlockSpec(arr.shape, lambda i: (0, 0))

    out = pl.pallas_call(
        kernel,
        out_shape=jax.ShapeDtypeStruct((S, padded), jnp.float32),
        grid=grid,
        in_specs=[pl.BlockSpec((R, tb), lambda i: (0, i)),
                  resident(w1_ext), resident(w2),
                  resident(b2), resident(sel_dt)],
        out_specs=pl.BlockSpec((S, tb), lambda i: (0, i)),
        compiler_params=pltpu.CompilerParams(
            dimension_semantics=("parallel",)),
        cost_estimate=pl.CostEstimate(
            flops=flops, transcendentals=0, bytes_accessed=bytes_accessed),
    )(slab, w1_ext, w2, b2, sel_dt)

    return out[:, :batch].T


def init_params(key, state_size, action_size, hidden_size):
    """Deterministic synthetic parameter init (glorot-ish scaling)."""
    in_dim = state_size + action_size
    out_a = state_size * state_size
    out_b = state_size * action_size
    ks = jax.random.split(key, 8)

    def w(k, fan_in, fan_out):
        scale = 1.0 / jnp.sqrt(jnp.float32(fan_in))
        return (jax.random.uniform(k, (fan_in, fan_out), jnp.float32,
                                   minval=-1.0, maxval=1.0) * scale)

    def b(k, fan_in, fan_out):
        scale = 1.0 / jnp.sqrt(jnp.float32(fan_in))
        return (jax.random.uniform(k, (1, fan_out), jnp.float32,
                                   minval=-1.0, maxval=1.0) * scale)

    wa1, ba1 = w(ks[0], in_dim, hidden_size), b(ks[1], in_dim, hidden_size)
    wa2, ba2 = w(ks[2], hidden_size, out_a), b(ks[3], hidden_size, out_a)
    wb1, bb1 = w(ks[4], in_dim, hidden_size), b(ks[5], in_dim, hidden_size)
    wb2, bb2 = w(ks[6], hidden_size, out_b), b(ks[7], hidden_size, out_b)
    return (wa1, ba1, wa2, ba2, wb1, bb1, wb2, bb2)


def reference_forward(target, state, action, params, *, dt):
    wa1, ba1, wa2, ba2, wb1, bb1, wb2, bb2 = params
    bsz, s = state.shape
    a = action.shape[-1]
    xu = jnp.concatenate([state, action], axis=-1)
    A = (jnp.maximum(xu @ wa1 + ba1, 0.0) @ wa2 + ba2).reshape(bsz, s, s)
    Bm = (jnp.maximum(xu @ wb1 + bb1, 0.0) @ wb2 + bb2).reshape(bsz, s, a)
    dx = (A @ state[..., None] + Bm @ action[..., None])[..., 0]
    return target + dx * dt


if __name__ == "__main__":
    state_size = 5
    action_size = 2
    hidden_size = 64
    dt = 0.1

    key = jax.random.PRNGKey(0)
    k_p, k_s, k_a, k_t = jax.random.split(key, 4)
    params = init_params(k_p, state_size, action_size, hidden_size)

    # Test 1: tiny batch, f32 matmuls, single grid step, strict tolerance.
    batch = 8
    state = jax.random.normal(k_s, (batch, state_size), jnp.float32)
    action = jax.random.normal(k_a, (batch, action_size), jnp.float32)
    target = jax.random.normal(k_t, (batch, state_size), jnp.float32)

    out_f32 = jax.block_until_ready(
        xy_model_forward(target, state, action, params, dt=dt,
                         use_bf16=False))
    ref = reference_forward(target, state, action, params, dt=dt)
    assert out_f32.shape == (batch, state_size)
    assert jnp.allclose(out_f32, ref, atol=1e-4, rtol=1e-4), \
        "f32 kernel mismatch vs JAX reference"

    # Test 2: multi-step batch grid (padding + resident weights) with bf16 MXU
    # inputs (v6e/v7x fast path); f32 accumulation keeps error small.
    batch2 = 200
    k_s2, k_a2, k_t2 = jax.random.split(jax.random.PRNGKey(1), 3)
    state2 = jax.random.normal(k_s2, (batch2, state_size), jnp.float32)
    action2 = jax.random.normal(k_a2, (batch2, action_size), jnp.float32)
    target2 = jax.random.normal(k_t2, (batch2, state_size), jnp.float32)

    out_bf16 = jax.block_until_ready(
        xy_model_forward(target2, state2, action2, params, dt=dt,
                         block_batch=128, use_bf16=True))
    ref2 = reference_forward(target2, state2, action2, params, dt=dt)
    assert out_bf16.shape == (batch2, state_size)
    assert jnp.allclose(out_bf16, ref2, atol=2e-2, rtol=2e-2), \
        "bf16 kernel mismatch vs JAX reference"

    print("KERNEL_OK")
</pallas_src>

<mosaic_0001>
module attributes {stable_mosaic.version = 11 : i64} {
  func.func @xy_model_kernel(%arg0: i32, %arg1: memref<13x128xf32, #tpu.memory_space<vmem>>, %arg2: memref<163x8xf32, #tpu.memory_space<vmem>>, %arg3: memref<35x128xf32, #tpu.memory_space<vmem>>, %arg4: memref<35x1xf32, #tpu.memory_space<vmem>>, %arg5: memref<5x35xf32, #tpu.memory_space<vmem>>, %arg6: memref<5x128xf32, #tpu.memory_space<vmem>>) attributes {dimension_semantics = [#tpu.dimension_semantics<parallel>], iteration_bounds = array<i64: 1>, scalar_prefetch = 0 : i64, scratch_operands = 0 : i64, tpu.core_type = #tpu.core_type<tc>, window_params = [{transform_indices = @transform_0, window_bounds = array<i64: 13, 128>}, {pipeline_mode = #tpu.pipeline_mode<synchronous>, transform_indices = @transform_1, window_bounds = array<i64: 163, 8>}, {pipeline_mode = #tpu.pipeline_mode<synchronous>, transform_indices = @transform_2, window_bounds = array<i64: 35, 128>}, {pipeline_mode = #tpu.pipeline_mode<synchronous>, transform_indices = @transform_3, window_bounds = array<i64: 35, 1>}, {pipeline_mode = #tpu.pipeline_mode<synchronous>, transform_indices = @transform_4, window_bounds = array<i64: 5, 35>}, {transform_indices = @transform_5, window_bounds = array<i64: 5, 128>}]} {
    %c0 = arith.constant 0 : index
    %c0_0 = arith.constant 0 : index
    %0 = vector.load %arg1[%c0, %c0_0] : memref<13x128xf32, #tpu.memory_space<vmem>>, vector<13x128xf32>
    %1 = vector.extract_strided_slice %0 {offsets = [0, 0], sizes = [8, 128], strides = [1, 1]} : vector<13x128xf32> to vector<8x128xf32>
    %2 = vector.extract_strided_slice %0 {offsets = [8, 0], sizes = [5, 128], strides = [1, 1]} : vector<13x128xf32> to vector<5x128xf32>
    %c0_1 = arith.constant 0 : index
    %c0_2 = arith.constant 0 : index
    %3 = vector.load %arg2[%c0_1, %c0_2] : memref<163x8xf32, #tpu.memory_space<vmem>>, vector<163x8xf32>
    %cst = arith.constant dense<0.000000e+00> : vector<163x128xf32>
    %4 = tpu.matmul %3, %1, %cst {dimension_numbers = #tpu.dot_dimension_numbers<[1], [0], [0], [1], [0, 0, 1, 1], [], []>} : vector<163x8xf32>, vector<8x128xf32>, vector<163x128xf32> -> vector<163x128xf32>
    %5 = vector.extract_strided_slice %4 {offsets = [0, 0], sizes = [128, 128], strides = [1, 1]} : vector<163x128xf32> to vector<128x128xf32>
    %cst_3 = arith.constant 0.000000e+00 : f32
    %6 = vector.broadcast %cst_3 : f32 to vector<128x128xf32>
    %7 = arith.maximumf %5, %6 : vector<128x128xf32>
    %8 = vector.extract_strided_slice %4 {offsets = [128, 0], sizes = [35, 128], strides = [1, 1]} : vector<163x128xf32> to vector<35x128xf32>
    %c0_4 = arith.constant 0 : index
    %c0_5 = arith.constant 0 : index
    %9 = vector.load %arg3[%c0_4, %c0_5] : memref<35x128xf32, #tpu.memory_space<vmem>>, vector<35x128xf32>
    %cst_6 = arith.constant dense<0.000000e+00> : vector<35x128xf32>
    %10 = tpu.matmul %9, %7, %cst_6 {dimension_numbers = #tpu.dot_dimension_numbers<[1], [0], [0], [1], [0, 0, 1, 1], [], []>} : vector<35x128xf32>, vector<128x128xf32>, vector<35x128xf32> -> vector<35x128xf32>
    %c0_7 = arith.constant 0 : index
    %c0_8 = arith.constant 0 : index
    %11 = vector.load %arg4[%c0_7, %c0_8] : memref<35x1xf32, #tpu.memory_space<vmem>>, vector<35x1xf32>
    %12 = vector.broadcast %11 : vector<35x1xf32> to vector<35x128xf32>
    %13 = arith.addf %10, %12 : vector<35x128xf32>
    %c0_9 = arith.constant 0 : index
    %c0_10 = arith.constant 0 : index
    %14 = vector.load %arg5[%c0_9, %c0_10] : memref<5x35xf32, #tpu.memory_space<vmem>>, vector<5x35xf32>
    %15 = arith.mulf %13, %8 : vector<35x128xf32>
    %cst_11 = arith.constant dense<0.000000e+00> : vector<5x128xf32>
    %16 = tpu.matmul %14, %15, %cst_11 {dimension_numbers = #tpu.dot_dimension_numbers<[1], [0], [0], [1], [0, 0, 1, 1], [], []>} : vector<5x35xf32>, vector<35x128xf32>, vector<5x128xf32> -> vector<5x128xf32>
    %17 = arith.addf %2, %16 : vector<5x128xf32>
    %c0_12 = arith.constant 0 : index
    %c0_13 = arith.constant 0 : index
    %18 = vector.load %arg6[%c0_12, %c0_13] : memref<5x128xf32, #tpu.memory_space<vmem>>, vector<5x128xf32>
    tpu.vector_store %arg6[%c0_12, %c0_13], %17 {strides = array<i32>} : memref<5x128xf32, #tpu.memory_space<vmem>>, vector<5x128xf32>,
    return
  }
  func.func @transform_0(%arg0: i32) -> (i32, i32) {
    %c0_i32 = arith.constant 0 : i32
    %c0_i32_0 = arith.constant 0 : i32
    return %c0_i32, %arg0 : i32, i32
  }
  func.func @transform_1(%arg0: i32) -> (i32, i32) {
    %c0_i32 = arith.constant 0 : i32
    %c0_i32_0 = arith.constant 0 : i32
    %c0_i32_1 = arith.constant 0 : i32
    return %c0_i32, %c0_i32_0 : i32, i32
  }
  func.func @transform_2(%arg0: i32) -> (i32, i32) {
    %c0_i32 = arith.constant 0 : i32
    %c0_i32_0 = arith.constant 0 : i32
    %c0_i32_1 = arith.constant 0 : i32
    return %c0_i32, %c0_i32_0 : i32, i32
  }
  func.func @transform_3(%arg0: i32) -> (i32, i32) {
    %c0_i32 = arith.constant 0 : i32
    %c0_i32_0 = arith.constant 0 : i32
    %c0_i32_1 = arith.constant 0 : i32
    return %c0_i32, %c0_i32_0 : i32, i32
  }
  func.func @transform_4(%arg0: i32) -> (i32, i32) {
    %c0_i32 = arith.constant 0 : i32
    %c0_i32_0 = arith.constant 0 : i32
    %c0_i32_1 = arith.constant 0 : i32
    return %c0_i32, %c0_i32_0 : i32, i32
  }
  func.func @transform_5(%arg0: i32) -> (i32, i32) {
    %c0_i32 = arith.constant 0 : i32
    %c0_i32_0 = arith.constant 0 : i32
    return %c0_i32, %arg0 : i32, i32
  }
}

</mosaic_0001>

<bundles_post_ra>
// kernel: tpu_custom_call.1
= control target key start
LH: loop header
LB: loop body
LE: loop exit
PB: predicated region body
PF: predicated region fallthrough
CT: control target
= control target key end

     0   :  { %vm44_vm0 = vcmask 64512   ;;  %v777_v2 = vmov 0.0   ;;  %vm778_vm1 = vmmov 0   ;;  %s1013_s0 = inlined_call_operand.vmem [shape: f32[13,128], index: 0, kind: input, shape index: {}]   ;;  %s1014_s1 = inlined_call_operand.vmem [shape: f32[163,8], index: 1, kind: input, shape index: {}]   ;;  %s1015_s2 = inlined_call_operand.vmem [shape: f32[35,128], index: 2, kind: input, shape index: {}]   ;;  %s1016_s3 = inlined_call_operand.vmem [shape: f32[35,1], index: 3, kind: input, shape index: {}]   ;;  %s1017_s4 = inlined_call_operand.vmem [shape: f32[5,35], index: 4, kind: input, shape index: {}]   ;;  %s1018_s5 = inlined_call_operand.hbm [shape: f32[5,128], index: 5, kind: output, shape index: {}]  }
   0x1   :  { %v21_v0 = vld [vmem:[%s1013_s0] sm:$0xff]  ;;  %591 = vmatprep.subr.mxu0 %v777_v2  ;;  %593 = vmatprep.mubr.msk.f32.mxu0 %vm778_vm1, %v777_v2  ;;  %v24_v3 = vld [vmem:[%s1014_s1 + $0x8] sm:$0xff] }
   0x2   :  { %v23_v1 = vld [vmem:[%s1014_s1] sm:$0xff]  ;;  %592 = vmatpush3.msra.mxu0 %v21_v0  ;;  %688 = vmatprep.mubr.msk.f32.mxu1 %vm778_vm1, %v777_v2 }
   0x3   :  { %594 = vmatmul.mubr.msk.f32.vlgmr.msra.gmra.mrb[0].mxu0 %vm44_vm0, %v23_v1 }
   0x4   :  { %596 = vmatprep.mubr.msk.f32.mxu0 %vm778_vm1, %v777_v2 }
   0x5   :  { %10 = vsyncpa [#allocation3], 0  ;;  %v25_v4 = vld [vmem:[%s1014_s1 + $0x10] sm:$0xff]  ;;  %v26_v5 = vld [vmem:[%s1014_s1 + $0x18] sm:$0xff]  ;;  %v779_v18 = vmov 0.0|0.0   ;;  %v780_v25 = vmov 0  }
   0x6   :  { %v27_v6 = vld [vmem:[%s1014_s1 + $0x20] sm:$0xff]  ;;  %v28_v7 = vld [vmem:[%s1014_s1 + $0x28] sm:$0xff]  ;;  %v29_v8 = vld [vmem:[%s1014_s1 + $0x30] sm:$0xff]  ;;  %716 = vmatprep.subr.bf16.mxu1 %v779_v18  ;;  %751 = vset.pattern.permute.xlu0 %v780_v25  ;;  %vm429_vm2 = vcmask 1042432   ;;  %vm425_vm3 = vcmask 285696   ;;  %s781_s8 = smov [#allocation2]  }
   0x7   :  { %597 = vmatmul.mubr.msk.f32.gmra.mrb[2].mxu0 %vm44_vm0, %v24_v3  ;;  %v30_v9 = vld [vmem:[%s1014_s1 + $0x38] sm:$0xff]  ;;  %v31_v10 = vld [vmem:[%s1014_s1 + $0x40] sm:$0xff]  ;;  %v32_v11 = vld [vmem:[%s1014_s1 + $0x48] sm:$0xff]  ;;  %752 = vset.pattern.permute.xlu1 %v780_v25  ;;  %s511_s9 = sshll.u32 %s781_s8, 4  ;;  %s512_s9 = int_to_ptr.vmem [resolvable:$true] %s511_s9 }
   0x8   :  { %599 = vmatprep.mubr.msk.f32.mxu0 %vm778_vm1, %v777_v2  ;;  %v33_v12 = vld [vmem:[%s1014_s1 + $0x50] sm:$0xff]  ;;  %v34_v13 = vld [vmem:[%s1014_s1 + $0x58] sm:$0xff]  ;;  %v35_v14 = vld [vmem:[%s1014_s1 + $0x60] sm:$0xff]  ;;  %s753_s10 = scalar_lea.vmem %s512_s9, 128  ;;  %p758_p1 = scmp.lt.s32.totalorder %s512_s9, %s512_s9 }
   0x9   :  { %v36_v15 = vld [vmem:[%s1014_s1 + $0x68] sm:$0xff]  ;;  %v37_v16 = vld [vmem:[%s1014_s1 + $0x70] sm:$0xff]  ;;  %v38_v17 = vld [vmem:[%s1014_s1 + $0x78] sm:$0xff]  ;;  %p754_p0 = scmp.ne.s32.totalorder %s512_s9, %s753_s10  ;;  %p759_p2 = scmp.lt.s32.totalorder %s753_s10, %s753_s10 }
   0xa   :  { %v39_v19 = vld [vmem:[%s1014_s1 + $0x80] sm:$0xff]  ;;  %v40_v20 = vld [vmem:[%s1014_s1 + $0x88] sm:$0xff]  ;;  %v41_v21 = vld [vmem:[%s1014_s1 + $0x90] sm:$0xff] }
   0xb   :  { %600 = vmatmul.mubr.msk.f32.gmra.mrb[4].mxu0 %vm44_vm0, %v25_v4  ;;  %v42_v22 = vld [vmem:[%s1014_s1 + $0x98] sm:$0xff]  ;;  %v43_v23 = vld [vmem:[%s1014_s1 + $0xa0] sm:$0x7]  ;;  %v301_v26 = vld [vmem:[%s1016_s3 + $0x10] sm:$0xff]  ;;  %p760_p3 = por %p759_p2, %p758_p1 }
   0xc   :  { %602 = vmatprep.mubr.msk.f32.mxu0 %vm778_vm1, %v777_v2  ;;  %v299_v24 = vld [vmem:[%s1016_s3] sm:$0xff]  ;;  %v300_v27 = vld [vmem:[%s1016_s3 + $0x8] sm:$0xff]  ;;  %316 = vperm.xlu1 %752, %v301_v26   ;;  %v302_v28 = vld [vmem:[%s1016_s3 + $0x18] sm:$0xff] }
   0xd   :  { %306 = vperm.xlu0 %751, %v299_v24   ;;  %v303_v29 = vld [vmem:[%s1016_s3 + $0x20] sm:$0x7]  ;;  %v295_v25 = vld [vmem:[%s1015_s2 + $0x8] sm:$0xff]  ;;  %v296_v26 = vld [vmem:[%s1015_s2 + $0x10] sm:$0xff]  ;;  %p761_p4 = pnand %p760_p3, %p754_p0 }
   0xe   :  { %v294_v24 = vld [vmem:[%s1015_s2] sm:$0xff] }
   0xf   :  { %603 = vmatmul.mubr.msk.f32.gmra.mrb[6].mxu0 %vm44_vm0, %v26_v5 }
  0x10   :  { %605 = vmatprep.mubr.msk.f32.mxu0 %vm778_vm1, %v777_v2  ;;  %321 = vperm.xlu1 %752, %v302_v28   ;;  %v298_v28 = vld [vmem:[%s1015_s2 + $0x20] sm:$0x7] }
  0x11   :  { %311 = vperm.xlu0 %751, %v300_v27   ;;  %v297_v27 = vld [vmem:[%s1015_s2 + $0x18] sm:$0xff] }
  0x13   :  { %606 = vmatmul.mubr.msk.f32.gmra.mrb[8].mxu0 %vm44_vm0, %v27_v6 }
  0x14   :  { %608 = vmatprep.mubr.msk.f32.mxu0 %vm778_vm1, %v777_v2 }
  0x15   :  { %326 = vperm.xlu0 %751, %v303_v29  }
  0x17   :  { %609 = vmatmul.mubr.msk.f32.gmra.mrb[10].mxu0 %vm44_vm0, %v28_v7 }
  0x18   :  { %611 = vmatprep.mubr.msk.f32.mxu0 %vm778_vm1, %v777_v2 }
  0x1b   :  { %612 = vmatmul.mubr.msk.f32.gmra.mrb[12].mxu0 %vm44_vm0, %v29_v8 }
  0x1c   :  { %614 = vmatprep.mubr.msk.f32.mxu0 %vm778_vm1, %v777_v2 }
  0x1f   :  { %615 = vmatmul.mubr.msk.f32.gmra.mrb[14].mxu0 %vm44_vm0, %v30_v9 }
  0x20   :  { %617 = vmatprep.mubr.msk.f32.mxu0 %vm778_vm1, %v777_v2 }
  0x23   :  { %618 = vmatmul.mubr.msk.f32.gmra.mrb[16].mxu0 %vm44_vm0, %v31_v10 }
  0x24   :  { %620 = vmatprep.mubr.msk.f32.mxu0 %vm778_vm1, %v777_v2 }
  0x27   :  { %621 = vmatmul.mubr.msk.f32.gmra.mrb[18].mxu0 %vm44_vm0, %v32_v11 }
  0x28   :  { %623 = vmatprep.mubr.msk.f32.mxu0 %vm778_vm1, %v777_v2 }
  0x2b   :  { %624 = vmatmul.mubr.msk.f32.gmra.mrb[20].mxu0 %vm44_vm0, %v33_v12 }
  0x2c   :  { %626 = vmatprep.mubr.msk.f32.mxu0 %vm778_vm1, %v777_v2 }
  0x2f   :  { %627 = vmatmul.mubr.msk.f32.gmra.mrb[22].mxu0 %vm44_vm0, %v34_v13 }
  0x30   :  { %629 = vmatprep.mubr.msk.f32.mxu0 %vm778_vm1, %v777_v2 }
  0x33   :  { %630 = vmatmul.mubr.msk.f32.gmra.mrb[24].mxu0 %vm44_vm0, %v35_v14 }
  0x34   :  { %632 = vmatprep.mubr.msk.f32.mxu0 %vm778_vm1, %v777_v2 }
  0x37   :  { %633 = vmatmul.mubr.msk.f32.gmra.mrb[26].mxu0 %vm44_vm0, %v36_v15 }
  0x38   :  { %635 = vmatprep.mubr.msk.f32.mxu0 %vm778_vm1, %v777_v2 }
  0x3b   :  { %636 = vmatmul.mubr.msk.f32.gmra.mrb[28].mxu0 %vm44_vm0, %v37_v16 }
  0x3c   :  { %638 = vmatprep.mubr.msk.f32.mxu0 %vm778_vm1, %v777_v2 }
  0x3f   :  { %639 = vmatmul.mubr.msk.f32.gmra.mrb[30].mxu0 %vm44_vm0, %v38_v17 }
  0x40   :  { %641 = vmatprep.mubr.msk.f32.mxu0 %vm778_vm1, %v777_v2 }
  0x43   :  { %642 = vmatmul.mubr.msk.f32.gmra.mrb[32].mxu0 %vm44_vm0, %v39_v19 }
  0x44   :  { %644 = vmatprep.mubr.msk.f32.mxu0 %vm778_vm1, %v777_v2 }
  0x47   :  { %645 = vmatmul.mubr.msk.f32.gmra.mrb[34].mxu0 %vm44_vm0, %v40_v20 }
  0x48   :  { %647 = vmatprep.mubr.msk.f32.mxu0 %vm778_vm1, %v777_v2 }
  0x4b   :  { %648 = vmatmul.mubr.msk.f32.gmra.mrb[36].mxu0 %vm44_vm0, %v41_v21 }
  0x4c   :  { %650 = vmatprep.mubr.msk.f32.mxu0 %vm778_vm1, %v777_v2 }
  0x4f   :  { %651 = vmatmul.mubr.msk.f32.gmra.mrb[38].mxu0 %vm44_vm0, %v42_v22 }
  0x50   :  { %653 = vmatprep.mubr.msk.f32.mxu0 %vm778_vm1, %v777_v2 }
  0x53   :  { %654 = vmatmul.mubr.msk.f32.gmra.mrb[40].mxu0 %vm44_vm0, %v43_v23 }
  0xd6   :  { %v174_v30 = vpop.f32.mrb[0].mxu0 }
  0xd7   :  { %v595_v31 = vpop.f32.mrb[1].mxu0  ;;  %v278_v33 = vmax.f32 %v174_v30, 0.0 }
  0xda   :  { %v179_v32 = vpop.f32.mrb[2].mxu0 }
  0xdb   :  { %v279_v34 = vmax.f32 %v179_v32, 0.0  ;;  %v598_v35 = vpop.f32.mrb[3].mxu0 }
  0xdd   :  { %v717_v36 = vpack.c.bf16 %v279_v34, %v278_v33 }
  0xde   :  { %v184_v37 = vpop.f32.mrb[4].mxu0 }
  0xdf   :  { %v601_v38 = vpop.f32.mrb[5].mxu0  ;;  %718 = vmatpush3.bf16.msra.mxu1 %v717_v36  ;;  %v280_v40 = vmax.f32 %v184_v37, 0.0 }
  0xe0   :  { %719 = vmatprep.subr.bf16.mxu1 %v779_v18 }
  0xe2   :  { %v189_v39 = vpop.f32.mrb[6].mxu0 }
  0xe3   :  { %v281_v41 = vmax.f32 %v189_v39, 0.0  ;;  %v604_v42 = vpop.f32.mrb[7].mxu0  ;;  %v307_v39 = vpop.permute.xlu0 %306 }
  0xe5   :  { %v720_v43 = vpack.c.bf16 %v281_v41, %v280_v40 }
  0xe6   :  { %v194_v44 = vpop.f32.mrb[8].mxu0 }
  0xe7   :  { %v607_v45 = vpop.f32.mrb[9].mxu0  ;;  %721 = vmatpush3.bf16.msra.mxu1 %v720_v43  ;;  %v282_v47 = vmax.f32 %v194_v44, 0.0  ;;  %v312_v44 = vpop.permute.xlu0 %311 }
  0xe8   :  { %722 = vmatprep.subr.bf16.mxu1 %v779_v18 }
  0xea   :  { %v199_v46 = vpop.f32.mrb[10].mxu0 }
  0xeb   :  { %v283_v48 = vmax.f32 %v199_v46, 0.0  ;;  %v610_v49 = vpop.f32.mrb[11].mxu0 }
  0xed   :  { %v723_v50 = vpack.c.bf16 %v283_v48, %v282_v47  ;;  %v317_v48 = vpop.permute.xlu1 %316 }
  0xee   :  { %v204_v51 = vpop.f32.mrb[12].mxu0 }
  0xef   :  { %v613_v52 = vpop.f32.mrb[13].mxu0  ;;  %724 = vmatpush3.bf16.msra.mxu1 %v723_v50  ;;  %v284_v54 = vmax.f32 %v204_v51, 0.0 }
  0xf0   :  { %725 = vmatprep.subr.bf16.mxu1 %v779_v18 }
  0xf2   :  { %v209_v53 = vpop.f32.mrb[14].mxu0 }
  0xf3   :  { %v285_v55 = vmax.f32 %v209_v53, 0.0  ;;  %v616_v56 = vpop.f32.mrb[15].mxu0 }
  0xf5   :  { %v726_v57 = vpack.c.bf16 %v285_v55, %v284_v54  ;;  %v322_v55 = vpop.permute.xlu1 %321 }
  0xf6   :  { %v214_v58 = vpop.f32.mrb[16].mxu0 }
  0xf7   :  { %v619_v59 = vpop.f32.mrb[17].mxu0  ;;  %727 = vmatpush3.bf16.msra.mxu1 %v726_v57  ;;  %v286_v61 = vmax.f32 %v214_v58, 0.0 }
  0xf8   :  { %728 = vmatprep.subr.bf16.mxu1 %v779_v18 }
  0xfa   :  { %v219_v60 = vpop.f32.mrb[18].mxu0 }
  0xfb   :  { %v287_v62 = vmax.f32 %v219_v60, 0.0  ;;  %v622_v63 = vpop.f32.mrb[19].mxu0  ;;  %v327_v60 = vpop.permute.xlu0 %326 }
  0xfd   :  { %v729_v0 = vpack.c.bf16 %v287_v62, %v286_v61 }
  0xfe   :  { %v224_v1 = vpop.f32.mrb[20].mxu0 }
  0xff   :  { %v625_v3 = vpop.f32.mrb[21].mxu0  ;;  %730 = vmatpush3.bf16.msra.mxu1 %v729_v0  ;;  %v288_v5 = vmax.f32 %v224_v1, 0.0 }
 0x100   :  { %731 = vmatprep.subr.bf16.mxu1 %v779_v18  ;;  %v419_v3 = vld [vmem:[%s1017_s4] sm:$0x1f] }
 0x102   :  { %v229_v4 = vpop.f32.mrb[22].mxu0 }
 0x103   :  { %v289_v6 = vmax.f32 %v229_v4, 0.0  ;;  %v628_v7 = vpop.f32.mrb[23].mxu0 }
 0x105   :  { %v732_v8 = vpack.c.bf16 %v289_v6, %v288_v5 }
 0x106   :  { %v234_v9 = vpop.f32.mrb[24].mxu0 }
 0x107   :  { %v631_v10 = vpop.f32.mrb[25].mxu0  ;;  %733 = vmatpush3.bf16.msra.mxu1 %v732_v8  ;;  %v290_v12 = vmax.f32 %v234_v9, 0.0 }
 0x108   :  { %734 = vmatprep.subr.bf16.mxu1 %v779_v18 }
 0x10a   :  { %v239_v11 = vpop.f32.mrb[26].mxu0 }
 0x10b   :  { %v291_v13 = vmax.f32 %v239_v11, 0.0  ;;  %v634_v14 = vpop.f32.mrb[27].mxu0 }
 0x10d   :  { %v735_v15 = vpack.c.bf16 %v291_v13, %v290_v12 }
 0x10e   :  { %v244_v16 = vpop.f32.mrb[28].mxu0 }
 0x10f   :  { %v637_v17 = vpop.f32.mrb[29].mxu0  ;;  %736 = vmatpush3.bf16.msra.mxu1 %v735_v15  ;;  %v292_v20 = vmax.f32 %v244_v16, 0.0 }
 0x110   :  { %737 = vmatprep.subr.bf16.mxu1 %v779_v18 }
 0x112   :  { %v249_v19 = vpop.f32.mrb[30].mxu0 }
 0x113   :  { %v293_v21 = vmax.f32 %v249_v19, 0.0  ;;  %v640_v22 = vpop.f32.mrb[31].mxu0 }
 0x115   :  { %v738_v23 = vpack.c.bf16 %v293_v21, %v292_v20 }
 0x116   :  { %v254_v29 = vpop.f32.mrb[32].mxu0 }
 0x117   :  { %739 = vmatpush3.bf16.msra.mxu1 %v738_v23  ;;  %v643_v30 = vpop.f32.mrb[33].mxu0 }
 0x118   :  { %740 = vmatprep.subr.bf16.mxu1 %v779_v18 }
 0x11a   :  { %689 = vmatmul.mubr.f32.vlgmr.msra.gmra.mrb[0].mxu1 %v294_v24  ;;  %v259_v31 = vpop.f32.mrb[34].mxu0 }
 0x11b   :  { %691 = vmatprep.mubr.msk.f32.mxu1 %vm778_vm1, %v777_v2  ;;  %v646_v32 = vpop.f32.mrb[35].mxu0 }
 0x11e   :  { %692 = vmatmul.mubr.f32.gmra.mrb[2].mxu1 %v295_v25  ;;  %v264_v33 = vpop.f32.mrb[36].mxu0 }
 0x11f   :  { %694 = vmatprep.mubr.msk.f32.mxu1 %vm778_vm1, %v777_v2  ;;  %v649_v34 = vpop.f32.mrb[37].mxu0 }
 0x122   :  { %695 = vmatmul.mubr.f32.gmra.mrb[4].mxu1 %v296_v26  ;;  %v269_v35 = vpop.f32.mrb[38].mxu0 }
 0x123   :  { %697 = vmatprep.mubr.msk.f32.mxu1 %vm778_vm1, %v777_v2  ;;  %v652_v36 = vpop.f32.mrb[39].mxu0 }
 0x126   :  { %698 = vmatmul.mubr.f32.gmra.mrb[6].mxu1 %v297_v27  ;;  %v274_v37 = vpop.f32.mrb[40].mxu0 }
 0x127   :  { %700 = vmatprep.mubr.msk.f32.mxu1 %vm778_vm1, %v777_v2  ;;  %v655_v38 = vpop.f32.mrb[41].mxu0 }
 0x12a   :  { %701 = vmatmul.mubr.f32.gmra.mrb[8].mxu1 %v298_v28 }
 0x12b   :  { %713 = vmatprep.mubr.msk.f32.mxu1 %vm778_vm1, %v777_v2 }
 0x1ed   :  { %v395_v40 = vpop.f32.mrb[0].mxu1 }
 0x1ee   :  { %v396_v41 = vadd.f32 %v395_v40, %v307_v39  ;;  %v690_v42 = vpop.f32.mrb[1].mxu1 }
 0x1f0   :  { %v420_v43 = vmul.f32 %v396_v41, %v254_v29 }
 0x1f1   :  { %v400_v45 = vpop.f32.mrb[2].mxu1 }
 0x1f2   :  { %v401_v46 = vadd.f32 %v400_v45, %v312_v44  ;;  %v693_v47 = vpop.f32.mrb[3].mxu1 }
 0x1f4   :  { %v421_v49 = vmul.f32 %v401_v46, %v259_v31 }
 0x1f5   :  { %v405_v50 = vpop.f32.mrb[4].mxu1 }
 0x1f6   :  { %v741_v51 = vpack.c.bf16 %v421_v49, %v420_v43  ;;  %v406_v52 = vadd.f32 %v405_v50, %v317_v48  ;;  %v696_v53 = vpop.f32.mrb[5].mxu1 }
 0x1f8   :  { %v422_v54 = vmul.f32 %v406_v52, %v264_v33  ;;  %742 = vmatpush3.bf16.msra.mxu1 %v741_v51 }
 0x1f9   :  { %v410_v56 = vpop.f32.mrb[6].mxu1  ;;  %743 = vmatprep.subr.bf16.mxu1 %v779_v18  ;;  %v22_v18 = vld [vmem:[%s1013_s0 + $0x8] sm:$0x1f] }
 0x1fa   :  { %v411_v57 = vadd.f32 %v410_v56, %v322_v55  ;;  %v699_v58 = vpop.f32.mrb[7].mxu1 }
 0x1fc   :  { %v423_v59 = vmul.f32 %v411_v57, %v269_v35 }
 0x1fd   :  { %v415_v61 = vpop.f32.mrb[8].mxu1 }
 0x1fe   :  { %v744_v62 = vpack.c.bf16 %v423_v59, %v422_v54  ;;  %v416_v63 = vadd.f32 %v415_v61, %v327_v60  ;;  %v702_v0 = vpop.f32.mrb[9].mxu1 }
 0x200   :  { %v424_v1 = vmul.f32 %v416_v63, %v274_v37  ;;  %745 = vmatpush3.bf16.msra.mxu1 %v744_v62 }
 0x201   :  { %711 = vmatprep.subr.mxu1 %v777_v2 }
 0x204   :  { %712 = vmatpush3.msk.msra.mxu1 %vm429_vm2, %v424_v1 }
 0x205   :  { %714 = vmatmul.mubr.msk.f32.vlgmr.msra.gmra.mrb[10].mxu1 %vm425_vm3, %v419_v3 }
 0x2d8   :  { %v499_v4 = vpop.f32.mrb[10].mxu1 }
 0x2d9   :  { %v503_v5 = vadd.f32 %v499_v4, %v22_v18  ;;  %v715_v6 = vpop.f32.mrb[11].mxu1 }
 0x2db   :  { %504 = vst [vmem:[#allocation2] sm:$0x1f] %v503_v5 }
 0x2dc   :  { %764 = shalt.err (!%p761_p4)
}
 0x2dd   :  { %s765_s12 = scalar_lea.hbm %s1018_s5, 128 }
 0x2de   :  { %p766_p5 = scmp.ne.s32.totalorder %s1018_s5, %s765_s12  ;;  %p769_p6 = scmp.lt.u32.totalorder %s765_s12, %s1018_s5 }
 0x2e0   :  { %p771_p7 = pnand %p769_p6, %p766_p5 }
 0x2e2   :  { %774 = shalt.err (!%p771_p7)
}
 0x2e3   :  { %514 = dma.vmem_to_hbm [thread:$0]  %s512_s9, 128, %s1018_s5, [#allocation3]  }
 0x2e4   :  { %775 = dma.done.wait [#allocation3], 128  }
 0x2e5   :  { %776 = vsyncadd [#allocation3], 4294967168 }
 0x2e6   :  { %518 = vsyncpa [#allocation3], 1 }

</bundles_post_ra>
